<compile_context>
chip_gen: v6e
topology: v6e:2x2x1
jax: 0.10.0
libtpu: 0.0.40
codegen_flags: <defaults>
</compile_context>

<pallas_src>
import functools

import numpy as np
import jax
import jax.numpy as jnp
from jax.experimental import pallas as pl
from jax.experimental.pallas import tpu as pltpu


# ----------------------------- Pallas kernel --------------------------------

def ensemble_mlp_kernel(x_ref, w0_ref, w1_ref, wl_ref, b_ref, out_ref, *,
                        n0, n1, n2):
    # Layer 0 (normalization pre-folded into w0/b0): (tb, d_in) @ (d_in, E*h0)
    h = jnp.dot(x_ref[...], w0_ref[...], preferred_element_type=jnp.float32)
    h = jnp.maximum(h + b_ref[0:1, :n0], 0.0)
    # Layer 1: block-diagonal weights keep the ensembles independent.
    h = jnp.dot(h, w1_ref[...], preferred_element_type=jnp.float32)
    h = jnp.maximum(h + b_ref[1:2, :n1], 0.0)
    # Output layer (identity activation), lane-padded to a 128-wide store.
    o = jnp.dot(h, wl_ref[...], preferred_element_type=jnp.float32)
    out_ref[...] = (o + b_ref[2:3, :n2]).astype(out_ref.dtype)


# --------------------------- weight packing (wrapper) ------------------------

def _round_up(n, m):
    return ((n + m - 1) // m) * m


def _block_diag(w):
    """(E, n, m) -> (E*n, E*m) block-diagonal matrix with blocks w[e]."""
    E, n, m = w.shape
    eye = jnp.eye(E, dtype=w.dtype)
    full = w[:, :, None, :] * eye[:, None, :, None]            # (E, n, E, m)
    return full.reshape(E * n, E * m)


def pack_params(params):
    """One-time layout plumbing: fold ensemble + normalization into the weights."""
    mu, std = params["input_mu"], params["input_std"]
    W0, b0 = params["W0"], params["b0"]
    W1, b1 = params["W1"], params["b1"]
    Wl, bl = params["Wl"], params["bl"]
    E, d_in, h0 = W0.shape
    _, _, h1 = W1.shape
    _, _, d_out = Wl.shape

    n0, n1 = E * h0, E * h1
    e_out = E * d_out
    out_pad = _round_up(e_out, 128)                 # lane-dense output width
    pad_w = max(_round_up(n0, 128), _round_up(n1, 128), out_pad)

    inv_std = (1.0 / std).astype(jnp.float32)                  # (d_in,)
    # Layer 0: x is ensemble-invariant, so the E weight matrices are
    # concatenated along the output (lane) dim; normalization is folded in:
    #   (x - mu)/std @ W0 + b0 == x @ (diag(1/std) W0) + (b0 - (mu/std) @ W0)
    W0p = jnp.transpose(W0, (1, 0, 2)).reshape(d_in, n0)       # (d_in, E*h0)
    b0p = b0.reshape(1, n0)
    W0f = inv_std[:, None] * W0p
    b0f = b0p - (mu * inv_std).reshape(1, d_in) @ W0p

    W1p = _block_diag(W1)                                      # (E*h0, E*h1)
    b1p = b1.reshape(1, n1)

    Wlp = _block_diag(Wl)                                      # (E*h1, E*d_out)
    Wlp = jnp.pad(Wlp, ((0, 0), (0, out_pad - e_out)))         # lane-pad to 128
    blp = jnp.pad(bl.reshape(1, e_out), ((0, 0), (0, out_pad - e_out)))

    # All three bias rows in one operand -> one DMA instead of three.
    bias = jnp.zeros((3, pad_w), jnp.float32)
    bias = bias.at[0, :n0].set(b0f[0])
    bias = bias.at[1, :n1].set(b1p[0])
    bias = bias.at[2, :out_pad].set(blp[0])

    return {
        "W0": W0f.astype(jnp.float32),
        "W1": W1p.astype(jnp.float32),
        "Wl": Wlp.astype(jnp.float32),
        "bias": bias,
        "dims": dict(E=E, d_in=d_in, h0=h0, h1=h1, d_out=d_out,
                     n0=n0, n1=n1, e_out=e_out, out_pad=out_pad),
    }


# ------------------------------- forward wrapper ------------------------------

def parallelized_ensemble_forward(x, packed, *, max_batch_tile=256):
    """x: (B, d_in) float32.  Returns (E, B, d_out), like the PyTorch module."""
    dims = packed["dims"]
    E, d_in, d_out = dims["E"], dims["d_in"], dims["d_out"]
    h0, h1 = dims["h0"], dims["h1"]
    e_out, out_pad = dims["e_out"], dims["out_pad"]
    B = x.shape[0]

    # Tile the batch so large rollout batches amortize launch/DMA overhead and
    # (on v7x) split across both TensorCores; toy B=8 is a single grid step.
    B_pad = _round_up(max(B, 8), 8)
    tb = min(max_batch_tile, B_pad)
    B_pad = _round_up(B_pad, tb)
    x = x.astype(jnp.float32)
    if B_pad != B:
        x = jnp.pad(x, ((0, B_pad - B), (0, 0)))

    w0, w1, wl, bias = packed["W0"], packed["W1"], packed["Wl"], packed["bias"]

    # Useful per-ensemble FLOPs only (zero off-diagonal blocks excluded).
    flops = 2 * B_pad * E * (d_in * h0 + h0 * h1 + h1 * d_out)
    bytes_accessed = 4 * (x.size + w0.size + w1.size + wl.size + bias.size
                          + B_pad * out_pad)

    kernel = functools.partial(ensemble_mlp_kernel,
                               n0=dims["n0"], n1=dims["n1"], n2=out_pad)

    out = pl.pallas_call(
        kernel,
        out_shape=jax.ShapeDtypeStruct((B_pad, out_pad), jnp.float32),
        grid=(B_pad // tb,),
        in_specs=[
            pl.BlockSpec((tb, d_in), lambda i: (i, 0)),
            # Constant index_maps: weights/biases stay VMEM-resident across
            # batch-tile steps (no re-DMA).
            pl.BlockSpec(w0.shape, lambda i: (0, 0)),
            pl.BlockSpec(w1.shape, lambda i: (0, 0)),
            pl.BlockSpec(wl.shape, lambda i: (0, 0)),
            pl.BlockSpec(bias.shape, lambda i: (0, 0)),
        ],
        out_specs=pl.BlockSpec((tb, out_pad), lambda i: (i, 0)),
        compiler_params=pltpu.CompilerParams(
            dimension_semantics=("parallel",)),
        cost_estimate=pl.CostEstimate(flops=flops, transcendentals=0,
                                      bytes_accessed=bytes_accessed),
    )(x, w0, w1, wl, bias)

    # (B_pad, out_pad) -> (E, B, d_out): pure layout plumbing outside the kernel.
    return out[:B, :e_out].reshape(B, E, d_out).transpose(1, 0, 2)


# ------------------------- parameter initialization --------------------------

def init_params(key, ensemble_size, input_size, hidden_sizes, output_size,
                b_init_value=0.0):
    """Mirrors ParallelizedEnsemble.__init__ (fmod(randn,2) * w_std, zero bias)."""
    params = {
        "input_mu": jnp.zeros((input_size,), jnp.float32),
        "input_std": jnp.ones((input_size,), jnp.float32),
    }
    sizes = list(hidden_sizes) + [output_size]
    names = [f"{i}" for i in range(len(hidden_sizes))] + ["l"]
    in_size = input_size
    for name, next_size in zip(names, sizes):
        key, wk = jax.random.split(key)
        w_std = 1.0 / (2.0 * np.sqrt(in_size))
        w = jax.random.normal(wk, (ensemble_size, in_size, next_size),
                              dtype=jnp.float32)
        w = jnp.fmod(w, 2.0) * w_std
        b = jnp.full((ensemble_size, 1, next_size), b_init_value, jnp.float32)
        params[f"W{name}"] = w
        params[f"b{name}"] = b
        in_size = next_size
    return params


# ----------------------------- reference (JAX) -------------------------------

def reference_forward(x, params):
    h = (x - params["input_mu"]) / params["input_std"]
    h = jnp.broadcast_to(h[None], (params["W0"].shape[0],) + h.shape)
    h = jnp.maximum(jnp.einsum("ebi,eio->ebo", h, params["W0"]) + params["b0"], 0.0)
    h = jnp.maximum(jnp.einsum("ebi,eio->ebo", h, params["W1"]) + params["b1"], 0.0)
    return jnp.einsum("ebi,eio->ebo", h, params["Wl"]) + params["bl"]


# ----------------------------------- main ------------------------------------

if __name__ == "__main__":
    ensemble_size = 4
    input_size = 16
    hidden_sizes = (32, 32)
    output_size = 4
    batch = 8

    key = jax.random.PRNGKey(0)
    key, pkey, xkey = jax.random.split(key, 3)
    params = init_params(pkey, ensemble_size, input_size, hidden_sizes,
                         output_size)
    x = jax.random.normal(xkey, (batch, input_size), dtype=jnp.float32)

    packed = pack_params(params)                 # one-time layout packing
    out = parallelized_ensemble_forward(x, packed)
    out = jax.block_until_ready(out)

    ref = reference_forward(x, params)
    np.testing.assert_allclose(np.asarray(out), np.asarray(ref),
                               rtol=1e-5, atol=1e-5)

    print("KERNEL_OK")
</pallas_src>

<mosaic_0001>
module attributes {stable_mosaic.version = 11 : i64} {
  func.func @ensemble_mlp_kernel(%arg0: i32, %arg1: memref<8x16xf32, #tpu.memory_space<vmem>>, %arg2: memref<16x128xf32, #tpu.memory_space<vmem>>, %arg3: memref<128x128xf32, #tpu.memory_space<vmem>>, %arg4: memref<128x128xf32, #tpu.memory_space<vmem>>, %arg5: memref<3x128xf32, #tpu.memory_space<vmem>>, %arg6: memref<8x128xf32, #tpu.memory_space<vmem>>) attributes {dimension_semantics = [#tpu.dimension_semantics<parallel>], iteration_bounds = array<i64: 1>, scalar_prefetch = 0 : i64, scratch_operands = 0 : i64, tpu.core_type = #tpu.core_type<tc>, window_params = [{transform_indices = @transform_0, window_bounds = array<i64: 8, 16>}, {pipeline_mode = #tpu.pipeline_mode<synchronous>, transform_indices = @transform_1, window_bounds = array<i64: 16, 128>}, {pipeline_mode = #tpu.pipeline_mode<synchronous>, transform_indices = @transform_2, window_bounds = array<i64: 128, 128>}, {pipeline_mode = #tpu.pipeline_mode<synchronous>, transform_indices = @transform_3, window_bounds = array<i64: 128, 128>}, {pipeline_mode = #tpu.pipeline_mode<synchronous>, transform_indices = @transform_4, window_bounds = array<i64: 3, 128>}, {transform_indices = @transform_5, window_bounds = array<i64: 8, 128>}]} {
    %c0 = arith.constant 0 : index
    %c0_0 = arith.constant 0 : index
    %0 = vector.load %arg1[%c0, %c0_0] : memref<8x16xf32, #tpu.memory_space<vmem>>, vector<8x16xf32>
    %c0_1 = arith.constant 0 : index
    %c0_2 = arith.constant 0 : index
    %1 = vector.load %arg2[%c0_1, %c0_2] : memref<16x128xf32, #tpu.memory_space<vmem>>, vector<16x128xf32>
    %cst = arith.constant dense<0.000000e+00> : vector<8x128xf32>
    %2 = tpu.matmul %0, %1, %cst {dimension_numbers = #tpu.dot_dimension_numbers<[1], [0], [0], [1], [0, 0, 1, 1], [], []>} : vector<8x16xf32>, vector<16x128xf32>, vector<8x128xf32> -> vector<8x128xf32>
    %c0_3 = arith.constant 0 : index
    %c0_4 = arith.constant 0 : index
    %3 = vector.load %arg5[%c0_3, %c0_4] : memref<3x128xf32, #tpu.memory_space<vmem>>, vector<1x128xf32>
    %4 = vector.broadcast %3 : vector<1x128xf32> to vector<8x128xf32>
    %5 = arith.addf %2, %4 : vector<8x128xf32>
    %cst_5 = arith.constant 0.000000e+00 : f32
    %6 = vector.broadcast %cst_5 : f32 to vector<8x128xf32>
    %7 = arith.maximumf %5, %6 : vector<8x128xf32>
    %c0_6 = arith.constant 0 : index
    %c0_7 = arith.constant 0 : index
    %8 = vector.load %arg3[%c0_6, %c0_7] : memref<128x128xf32, #tpu.memory_space<vmem>>, vector<128x128xf32>
    %cst_8 = arith.constant dense<0.000000e+00> : vector<8x128xf32>
    %9 = tpu.matmul %7, %8, %cst_8 {dimension_numbers = #tpu.dot_dimension_numbers<[1], [0], [0], [1], [0, 0, 1, 1], [], []>} : vector<8x128xf32>, vector<128x128xf32>, vector<8x128xf32> -> vector<8x128xf32>
    %c1 = arith.constant 1 : index
    %c0_9 = arith.constant 0 : index
    %10 = vector.load %arg5[%c1, %c0_9] : memref<3x128xf32, #tpu.memory_space<vmem>>, vector<1x128xf32>
    %11 = vector.broadcast %10 : vector<1x128xf32> to vector<8x128xf32>
    %12 = arith.addf %9, %11 : vector<8x128xf32>
    %cst_10 = arith.constant 0.000000e+00 : f32
    %13 = vector.broadcast %cst_10 : f32 to vector<8x128xf32>
    %14 = arith.maximumf %12, %13 : vector<8x128xf32>
    %c0_11 = arith.constant 0 : index
    %c0_12 = arith.constant 0 : index
    %15 = vector.load %arg4[%c0_11, %c0_12] : memref<128x128xf32, #tpu.memory_space<vmem>>, vector<128x128xf32>
    %cst_13 = arith.constant dense<0.000000e+00> : vector<8x128xf32>
    %16 = tpu.matmul %14, %15, %cst_13 {dimension_numbers = #tpu.dot_dimension_numbers<[1], [0], [0], [1], [0, 0, 1, 1], [], []>} : vector<8x128xf32>, vector<128x128xf32>, vector<8x128xf32> -> vector<8x128xf32>
    %c2 = arith.constant 2 : index
    %c0_14 = arith.constant 0 : index
    %17 = vector.load %arg5[%c2, %c0_14] : memref<3x128xf32, #tpu.memory_space<vmem>>, vector<1x128xf32>
    %18 = vector.broadcast %17 : vector<1x128xf32> to vector<8x128xf32>
    %19 = arith.addf %16, %18 : vector<8x128xf32>
    %c0_15 = arith.constant 0 : index
    %c0_16 = arith.constant 0 : index
    %20 = vector.load %arg6[%c0_15, %c0_16] : memref<8x128xf32, #tpu.memory_space<vmem>>, vector<8x128xf32>
    tpu.vector_store %arg6[%c0_15, %c0_16], %19 {strides = array<i32>} : memref<8x128xf32, #tpu.memory_space<vmem>>, vector<8x128xf32>,
    return
  }
  func.func @transform_0(%arg0: i32) -> (i32, i32) {
    %c0_i32 = arith.constant 0 : i32
    %c0_i32_0 = arith.constant 0 : i32
    return %arg0, %c0_i32 : i32, i32
  }
  func.func @transform_1(%arg0: i32) -> (i32, i32) {
    %c0_i32 = arith.constant 0 : i32
    %c0_i32_0 = arith.constant 0 : i32
    %c0_i32_1 = arith.constant 0 : i32
    return %c0_i32, %c0_i32_0 : i32, i32
  }
  func.func @transform_2(%arg0: i32) -> (i32, i32) {
    %c0_i32 = arith.constant 0 : i32
    %c0_i32_0 = arith.constant 0 : i32
    %c0_i32_1 = arith.constant 0 : i32
    return %c0_i32, %c0_i32_0 : i32, i32
  }
  func.func @transform_3(%arg0: i32) -> (i32, i32) {
    %c0_i32 = arith.constant 0 : i32
    %c0_i32_0 = arith.constant 0 : i32
    %c0_i32_1 = arith.constant 0 : i32
    return %c0_i32, %c0_i32_0 : i32, i32
  }
  func.func @transform_4(%arg0: i32) -> (i32, i32) {
    %c0_i32 = arith.constant 0 : i32
    %c0_i32_0 = arith.constant 0 : i32
    %c0_i32_1 = arith.constant 0 : i32
    return %c0_i32, %c0_i32_0 : i32, i32
  }
  func.func @transform_5(%arg0: i32) -> (i32, i32) {
    %c0_i32 = arith.constant 0 : i32
    %c0_i32_0 = arith.constant 0 : i32
    return %arg0, %c0_i32 : i32, i32
  }
}

</mosaic_0001>

<bundles_post_ra>
// kernel: tpu_custom_call.1
= control target key start
LH: loop header
LB: loop body
LE: loop exit
PB: predicated region body
PF: predicated region fallthrough
CT: control target
= control target key end

     0   :  { %10 = vsyncpa [#allocation3], 0  ;;  %s705_s0 = inlined_call_operand.hbm [shape: f32[8,16], index: 0, kind: input, shape index: {}]   ;;  %s706_s1 = inlined_call_operand.hbm [shape: f32[16,128], index: 1, kind: input, shape index: {}]   ;;  %s707_s2 = inlined_call_operand.hbm [shape: f32[128,128], index: 2, kind: input, shape index: {}]   ;;  %s708_s3 = inlined_call_operand.hbm [shape: f32[128,128], index: 3, kind: input, shape index: {}]   ;;  %s709_s4 = inlined_call_operand.vmem [shape: f32[3,128], index: 4, kind: input, shape index: {}]   ;;  %s710_s5 = inlined_call_operand.hbm [shape: f32[8,128], index: 5, kind: output, shape index: {}]  }
   0x1   :  { %11 = vsyncpa [#allocation6], 0 }
   0x2   :  { %12 = vsyncpa [#allocation9], 0 }
   0x3   :  { %13 = vsyncpa [#allocation4], 0  ;;  %s593_s18 = smov [#allocation5]  }
   0x4   :  { %s29_s19 = sshll.u32 %s593_s18, 4  ;;  %s30_s19 = int_to_ptr.vmem [resolvable:$true] %s29_s19 }
   0x5   :  { %s493_s20 = scalar_lea.vmem %s30_s19, 256  ;;  %p498_p1 = scmp.lt.s32.totalorder %s30_s19, %s30_s19 }
   0x6   :  { %p494_p0 = scmp.ne.s32.totalorder %s30_s19, %s493_s20  ;;  %p499_p2 = scmp.lt.s32.totalorder %s493_s20, %s493_s20 }
   0x8   :  { %p500_p3 = por %p499_p2, %p498_p1 }
   0xa   :  { %p501_p4 = pnand %p500_p3, %p494_p0 }
   0xc   :  { %504 = shalt.err (!%p501_p4)
}
   0xd   :  { %s594_s21 = smov 128   ;;  %s595_s22 = smov 8  }
   0xe   :  { %35 = dma.hbm_to_vmem [thread:$0]  %s706_s1, 256, %s30_s19, [#allocation6], %s594_s21, %s594_s21, %s595_s22  }
   0xf   :  { %s596_s25 = smov [#allocation2]   ;;  %s597_s27 = smov [#allocation7]  }
  0x10   :  { %s20_s26 = sshll.u32 %s596_s25, 4  ;;  %s41_s28 = sshll.u32 %s597_s27, 4  ;;  %s21_s26 = int_to_ptr.vmem [resolvable:$true] %s20_s26  ;;  %s42_s28 = int_to_ptr.vmem [resolvable:$true] %s41_s28 }
  0x11   :  { %s513_s29 = scalar_lea.vmem %s21_s26, 128  ;;  %p518_p6 = scmp.lt.s32.totalorder %s21_s26, %s21_s26 }
  0x12   :  { %p514_p5 = scmp.ne.s32.totalorder %s21_s26, %s513_s29  ;;  %p519_p7 = scmp.lt.s32.totalorder %s513_s29, %s513_s29 }
  0x14   :  { %p520_p8 = por %p519_p7, %p518_p6 }
  0x16   :  { %p521_p9 = pnand %p520_p8, %p514_p5 }
  0x18   :  { %524 = shalt.err (!%p521_p9)
}
  0x19   :  { %23 = dma.hbm_to_vmem [thread:$0]  %s705_s0, 128, %s21_s26, [#allocation3]  }
  0x1a   :  { %s533_s7 = scalar_lea.vmem %s42_s28, 2048  ;;  %p538_p11 = scmp.lt.s32.totalorder %s42_s28, %s42_s28 }
  0x1b   :  { %p534_p10 = scmp.ne.s32.totalorder %s42_s28, %s533_s7  ;;  %p539_p12 = scmp.lt.s32.totalorder %s533_s7, %s533_s7 }
  0x1d   :  { %p540_p13 = por %p539_p12, %p538_p11 }
  0x1f   :  { %p541_p0 = pnand %p540_p13, %p534_p10 }
  0x21   :  { %544 = shalt.err (!%p541_p0)
}
  0x22   :  { %47 = dma.hbm_to_vmem [thread:$0]  %s707_s2, 2048, %s42_s28, [#allocation6], %s594_s21, %s594_s21, %s595_s22  }
  0x23   :  { %s598_s9 = smov [#allocation8]  }
  0x24   :  { %s53_s10 = sshll.u32 %s598_s9, 4  ;;  %s54_s10 = int_to_ptr.vmem [resolvable:$true] %s53_s10 }
  0x25   :  { %s553_s11 = scalar_lea.vmem %s54_s10, 2048  ;;  %p558_p2 = scmp.lt.s32.totalorder %s54_s10, %s54_s10 }
  0x26   :  { %p554_p1 = scmp.ne.s32.totalorder %s54_s10, %s553_s11  ;;  %p559_p3 = scmp.lt.s32.totalorder %s553_s11, %s553_s11 }
  0x28   :  { %p560_p4 = por %p559_p3, %p558_p2 }
  0x2a   :  { %p561_p5 = pnand %p560_p4, %p554_p1 }
  0x2c   :  { %564 = shalt.err (!%p561_p5)
}
  0x2d   :  { %59 = dma.hbm_to_vmem [thread:$0]  %s708_s3, 2048, %s54_s10, [#allocation9], %s594_s21, %s594_s21, %s595_s22  }
  0x2e   :  { %585 = dma.done.wait [#allocation3], 128  }
  0x2f   :  { %586 = vsyncadd [#allocation3], 4294967168 }
  0x30   :  { %587 = dma.done.wait [#allocation6], 2304  }
  0x31   :  { %588 = vsyncadd [#allocation6], 4294964992 }
  0x32   :  { %589 = dma.done.wait [#allocation9], 2048  }
  0x33   :  { %590 = vsyncadd [#allocation9], 4294965248  ;;  %v599_v0 = vmov 0.0   ;;  %vm600_vm0 = vmmov 0   ;;  %v76_v1 = vld [vmem:[#allocation5 + $0x8] sm:$0xff]  ;;  %v75_v2 = vld [vmem:[#allocation5] sm:$0xff] }
  0x34   :  { %399 = vmatprep.subr.mxu0 %v599_v0  ;;  %403 = vmatprep.mubr.msk.f32.mxu0 %vm600_vm0, %v599_v0  ;;  %v74_v3 = vld [vmem:[#allocation2] sm:$0xff]  ;;  %vm82_vm1 = vcmask 130048   ;;  %v172_v4 = vld [vmem:[#allocation7 + $0x78] sm:$0xff]  ;;  %v171_v5 = vld [vmem:[#allocation7 + $0x70] sm:$0xff]  ;;  %s601_s17 = smov [#allocation10]  }
  0x35   :  { %406 = vmatprep.subr.mxu1 %v599_v0  ;;  %438 = vmatprep.mubr.msk.f32.mxu1 %vm600_vm0, %v599_v0  ;;  %v170_v6 = vld [vmem:[#allocation7 + $0x68] sm:$0xff]  ;;  %v169_v7 = vld [vmem:[#allocation7 + $0x60] sm:$0xff]  ;;  %v168_v8 = vld [vmem:[#allocation7 + $0x58] sm:$0xff]  ;;  %s347_s18 = sshll.u32 %s601_s17, 4  ;;  %s348_s18 = int_to_ptr.vmem [resolvable:$true] %s347_s18 }
  0x36   :  { %400 = vmatpush3.msra.mxu0 %v76_v1  ;;  %407 = vmatpush3.msra.mxu1 %v172_v4  ;;  %v167_v9 = vld [vmem:[#allocation7 + $0x50] sm:$0xff]  ;;  %v166_v10 = vld [vmem:[#allocation7 + $0x48] sm:$0xff]  ;;  %v165_v11 = vld [vmem:[#allocation7 + $0x40] sm:$0xff]  ;;  %s565_s19 = scalar_lea.vmem %s348_s18, 128  ;;  %p570_p7 = scmp.lt.s32.totalorder %s348_s18, %s348_s18 }
  0x37   :  { %401 = vmatprep.subr.mxu0 %v599_v0  ;;  %408 = vmatprep.subr.mxu1 %v599_v0  ;;  %v164_v12 = vld [vmem:[#allocation7 + $0x38] sm:$0xff]  ;;  %v163_v13 = vld [vmem:[#allocation7 + $0x30] sm:$0xff]  ;;  %v162_v14 = vld [vmem:[#allocation7 + $0x28] sm:$0xff]  ;;  %p566_p6 = scmp.ne.s32.totalorder %s348_s18, %s565_s19  ;;  %p571_p8 = scmp.lt.s32.totalorder %s565_s19, %s565_s19 }
  0x38   :  { %402 = vmatpush3.msra.mxu0 %v75_v2  ;;  %409 = vmatpush3.msra.mxu1 %v171_v5  ;;  %v161_v15 = vld [vmem:[#allocation7 + $0x20] sm:$0xff]  ;;  %v160_v16 = vld [vmem:[#allocation7 + $0x18] sm:$0xff]  ;;  %v159_v17 = vld [vmem:[#allocation7 + $0x10] sm:$0xff] }
  0x39   :  { %404 = vmatmul.mubr.msk.f32.vlgmr.msra.gmra.mxu0 %vm82_vm1, %v74_v3  ;;  %410 = vmatprep.subr.mxu1 %v599_v0  ;;  %v158_v18 = vld [vmem:[#allocation7 + $0x8] sm:$0xff]  ;;  %v157_v19 = vld [vmem:[#allocation7] sm:$0xff]  ;;  %v264_v20 = vld [vmem:[#allocation8 + $0x78] sm:$0xff]  ;;  %p572_p9 = por %p571_p8, %p570_p7 }
  0x3a   :  { %441 = vmatprep.subr.mxu0 %v599_v0  ;;  %411 = vmatpush3.msra.mxu1 %v170_v6  ;;  %v263_v21 = vld [vmem:[#allocation8 + $0x70] sm:$0xff]  ;;  %v262_v22 = vld [vmem:[#allocation8 + $0x68] sm:$0xff]  ;;  %v261_v23 = vld [vmem:[#allocation8 + $0x60] sm:$0xff] }
  0x3b   :  { %473 = vmatprep.mubr.msk.f32.mxu0 %vm600_vm0, %v599_v0  ;;  %412 = vmatprep.subr.mxu1 %v599_v0  ;;  %v260_v24 = vld [vmem:[#allocation8 + $0x58] sm:$0xff]  ;;  %v259_v25 = vld [vmem:[#allocation8 + $0x50] sm:$0xff]  ;;  %v258_v26 = vld [vmem:[#allocation8 + $0x48] sm:$0xff]  ;;  %p573_p10 = pnand %p572_p9, %p566_p6 }
  0x3c   :  { %413 = vmatpush3.msra.mxu1 %v169_v7  ;;  %442 = vmatpush3.msra.mxu0 %v264_v20  ;;  %v257_v27 = vld [vmem:[#allocation8 + $0x40] sm:$0xff]  ;;  %v256_v28 = vld [vmem:[#allocation8 + $0x38] sm:$0xff]  ;;  %v255_v29 = vld [vmem:[#allocation8 + $0x30] sm:$0xff] }
  0x3d   :  { %414 = vmatprep.subr.mxu1 %v599_v0  ;;  %443 = vmatprep.subr.mxu0 %v599_v0  ;;  %v254_v30 = vld [vmem:[#allocation8 + $0x28] sm:$0xff]  ;;  %v253_v31 = vld [vmem:[#allocation8 + $0x20] sm:$0xff]  ;;  %v252_v32 = vld [vmem:[#allocation8 + $0x18] sm:$0xff] }
  0x3e   :  { %415 = vmatpush3.msra.mxu1 %v168_v8  ;;  %444 = vmatpush3.msra.mxu0 %v263_v21  ;;  %v358_v33 = vld [vmem:[%s709_s4] ss:$0 sm:$0xff]  ;;  %v251_v38 = vld [vmem:[#allocation8 + $0x10] sm:$0xff]  ;;  %v249_v40 = vld [vmem:[#allocation8] sm:$0xff] }
  0x3f   :  { %416 = vmatprep.subr.mxu1 %v599_v0  ;;  %445 = vmatprep.subr.mxu0 %v599_v0  ;;  %v250_v39 = vld [vmem:[#allocation8 + $0x8] sm:$0xff] }
  0x40   :  { %417 = vmatpush3.msra.mxu1 %v167_v9  ;;  %446 = vmatpush3.msra.mxu0 %v262_v22  ;;  %v360_v41 = vld [vmem:[%s709_s4 + $0x1] ss:$0 sm:$0xff]  ;;  %v361_v46 = vld [vmem:[%s709_s4 + $0x2] ss:$0 sm:$0xff] }
  0x41   :  { %418 = vmatprep.subr.mxu1 %v599_v0  ;;  %447 = vmatprep.subr.mxu0 %v599_v0 }
  0x42   :  { %419 = vmatpush3.msra.mxu1 %v166_v10  ;;  %448 = vmatpush3.msra.mxu0 %v261_v23 }
  0x43   :  { %420 = vmatprep.subr.mxu1 %v599_v0  ;;  %449 = vmatprep.subr.mxu0 %v599_v0 }
  0x44   :  { %421 = vmatpush3.msra.mxu1 %v165_v11  ;;  %450 = vmatpush3.msra.mxu0 %v260_v24 }
  0x45   :  { %422 = vmatprep.subr.mxu1 %v599_v0  ;;  %451 = vmatprep.subr.mxu0 %v599_v0 }
  0x46   :  { %423 = vmatpush3.msra.mxu1 %v164_v12  ;;  %452 = vmatpush3.msra.mxu0 %v259_v25 }
  0x47   :  { %424 = vmatprep.subr.mxu1 %v599_v0  ;;  %453 = vmatprep.subr.mxu0 %v599_v0 }
  0x48   :  { %425 = vmatpush3.msra.mxu1 %v163_v13  ;;  %454 = vmatpush3.msra.mxu0 %v258_v26 }
  0x49   :  { %426 = vmatprep.subr.mxu1 %v599_v0  ;;  %455 = vmatprep.subr.mxu0 %v599_v0 }
  0x4a   :  { %427 = vmatpush3.msra.mxu1 %v162_v14  ;;  %456 = vmatpush3.msra.mxu0 %v257_v27 }
  0x4b   :  { %428 = vmatprep.subr.mxu1 %v599_v0  ;;  %457 = vmatprep.subr.mxu0 %v599_v0 }
  0x4c   :  { %429 = vmatpush3.msra.mxu1 %v161_v15  ;;  %458 = vmatpush3.msra.mxu0 %v256_v28 }
  0x4d   :  { %430 = vmatprep.subr.mxu1 %v599_v0  ;;  %459 = vmatprep.subr.mxu0 %v599_v0 }
  0x4e   :  { %431 = vmatpush3.msra.mxu1 %v160_v16  ;;  %460 = vmatpush3.msra.mxu0 %v255_v29 }
  0x4f   :  { %432 = vmatprep.subr.mxu1 %v599_v0  ;;  %461 = vmatprep.subr.mxu0 %v599_v0 }
  0x50   :  { %433 = vmatpush3.msra.mxu1 %v159_v17  ;;  %462 = vmatpush3.msra.mxu0 %v254_v30 }
  0x51   :  { %434 = vmatprep.subr.mxu1 %v599_v0  ;;  %463 = vmatprep.subr.mxu0 %v599_v0 }
  0x52   :  { %435 = vmatpush3.msra.mxu1 %v158_v18  ;;  %464 = vmatpush3.msra.mxu0 %v253_v31 }
  0x53   :  { %436 = vmatprep.subr.mxu1 %v599_v0  ;;  %465 = vmatprep.subr.mxu0 %v599_v0 }
  0x54   :  { %437 = vmatpush3.msra.mxu1 %v157_v19  ;;  %466 = vmatpush3.msra.mxu0 %v252_v32 }
  0x55   :  { %467 = vmatprep.subr.mxu0 %v599_v0 }
  0x56   :  { %468 = vmatpush3.msra.mxu0 %v251_v38 }
  0x57   :  { %469 = vmatprep.subr.mxu0 %v599_v0 }
  0x58   :  { %470 = vmatpush3.msra.mxu0 %v250_v39 }
  0x59   :  { %471 = vmatprep.subr.mxu0 %v599_v0 }
  0x5a   :  { %472 = vmatpush3.msra.mxu0 %v249_v40 }
  0xf9   :  { %v152_v34 = vpop.f32.mrf.mxu0 }
  0xfa   :  { %v153_v35 = vadd.f32 %v358_v33, %v152_v34 }
  0xfb   :  { %v405_v36 = vpop.f32.mrf.mxu0 }
  0xfc   :  { %v156_v37 = vmax.f32 %v153_v35, 0.0 }
  0xfe   :  { %439 = vmatmul.mubr.f32.vlgmr.msra.gmra.mxu1 %v156_v37 }
 0x1be   :  { %v244_v42 = vpop.f32.mrf.mxu1 }
 0x1bf   :  { %v245_v43 = vadd.f32 %v360_v41, %v244_v42 }
 0x1c0   :  { %v440_v44 = vpop.f32.mrf.mxu1 }
 0x1c1   :  { %v248_v45 = vmax.f32 %v245_v43, 0.0 }
 0x1c3   :  { %474 = vmatmul.mubr.f32.vlgmr.msra.gmra.mxu0 %v248_v45 }
 0x283   :  { %v336_v47 = vpop.f32.mrf.mxu0 }
 0x284   :  { %v337_v48 = vadd.f32 %v361_v46, %v336_v47 }
 0x285   :  { %v475_v49 = vpop.f32.mrf.mxu0 }
 0x286   :  { %340 = vst [vmem:[#allocation10] sm:$0xff] %v337_v48 }
 0x287   :  { %576 = shalt.err (!%p573_p10)
}
 0x288   :  { %350 = dma.vmem_to_hbm [thread:$0]  %s348_s18, 128, %s710_s5, [#allocation4]  }
 0x289   :  { %591 = dma.done.wait [#allocation4], 128  }
 0x28a   :  { %592 = vsyncadd [#allocation4], 4294967168 }
 0x28b   :  { %354 = vsyncpa [#allocation3], 1 }
 0x28c   :  { %355 = vsyncpa [#allocation6], 1 }
 0x28d   :  { %356 = vsyncpa [#allocation9], 1 }
 0x28e   :  { %357 = vsyncpa [#allocation4], 1 }

</bundles_post_ra>
